<compile_context>
chip_gen: v7x
topology: tpu7x:2x2x1
jax: 0.10.0
libtpu: 0.0.40
codegen_flags: <defaults>
</compile_context>

<pallas_src>
import jax
import jax.numpy as jnp
from jax.experimental import pallas as pl
from jax.experimental.pallas import tpu as pltpu

# ---- small, deterministic model dimensions -------------------------------
B = 2           # batch (real lever would be batching to M>=128; kept small per spec)
T = 1024        # audio samples
W = 128         # frame window (lane width)
F_FR = T // W   # 8 frames per clip
H = 128         # stand-in audio-tower hidden size (== W so weight slabs pack)
P = 512         # CLAP projection dim == classifier in_features
C = 2           # n_classes
C_PAD = 128     # lane-dense padding for the classifier head output


def _full_spec(shape):
    # whole-array block at grid point 0
    return pl.BlockSpec(shape, lambda i: tuple(0 for _ in shape))


def _make_kernel(b, n_frames):
    def kernel(frames_ref, wa_ref, wb_ref, bias_ref, out_ref):
        # Packed operands:
        #   wa_ref  [W, H + P]        bf16  : [wf | w1]
        #   wb_ref  [P, P + C_PAD]    bf16  : [w2 | wc_pad]
        #   bias_ref[1, H+P+P+C_PAD]  f32   : [bf | b1 | b2 | bc_pad]
        wf = wa_ref[:, :H]
        w1 = wa_ref[:, H:H + P]
        w2 = wb_ref[:, :P]
        wc = wb_ref[:, P:]
        bf = bias_ref[:, :H]
        b1 = bias_ref[:, H:H + P]
        b2 = bias_ref[:, H + P:H + 2 * P]
        bc = bias_ref[:, H + 2 * P:]

        # Stand-in audio tower: per-frame linear + ReLU   [b*F, W] -> [b*F, H]
        frames = frames_ref[...]
        feats = jnp.dot(frames.astype(jnp.bfloat16), wf,
                        preferred_element_type=jnp.float32)
        feats = jnp.maximum(feats + bf, 0.0)

        # Mean-pool over frames (in-kernel, no pooling matmul)   -> [b, H]
        pooled = jnp.mean(feats.reshape(b, n_frames, H), axis=1)

        # CLAP audio_projection: Linear -> ReLU -> Linear        -> [b, P]
        h1 = jnp.dot(pooled.astype(jnp.bfloat16), w1,
                     preferred_element_type=jnp.float32)
        h1 = jnp.maximum(h1 + b1, 0.0)
        emb = jnp.dot(h1.astype(jnp.bfloat16), w2,
                      preferred_element_type=jnp.float32) + b2

        # L2 normalize: x / max(||x||, 1e-12) == x * rsqrt(max(||x||^2, 1e-24))
        sum_sq = jnp.sum(emb * emb, axis=-1, keepdims=True)
        emb_n = emb * jax.lax.rsqrt(jnp.maximum(sum_sq, 1e-24))

        # Dropout(0.5) in eval mode == identity.
        # Classifier head, lane-padded to C_PAD (padded cols/bias are zero).
        logits_pad = jnp.dot(emb_n.astype(jnp.bfloat16), wc,
                             preferred_element_type=jnp.float32) + bc

        # Single lane-dense output slab: [emb | padded logits]
        out_ref[:, :P] = emb_n
        out_ref[:, P:] = logits_pad

    return kernel


def init_params(key):
    """Raw (f32) parameters, matching the PyTorch parameterization."""
    ks = jax.random.split(key, 8)
    scale = 0.02
    wf = scale * jax.random.normal(ks[0], (W, H), jnp.float32)
    bf = scale * jax.random.normal(ks[1], (1, H), jnp.float32)
    w1 = scale * jax.random.normal(ks[2], (H, P), jnp.float32)
    b1 = scale * jax.random.normal(ks[3], (1, P), jnp.float32)
    w2 = scale * jax.random.normal(ks[4], (P, P), jnp.float32)
    b2 = scale * jax.random.normal(ks[5], (1, P), jnp.float32)
    wc = scale * jax.random.normal(ks[6], (P, C), jnp.float32)   # Linear weight^T
    bc = scale * jax.random.normal(ks[7], (1, C), jnp.float32)
    return (wf, bf, w1, b1, w2, b2, wc, bc)


def pack_params(params):
    """One-time packing: bf16 weight slabs + concatenated f32 biases.

    Done once outside the per-call path (cuts DMA descriptors 10 -> 4 and
    halves the dominant w2 HBM traffic)."""
    wf, bf, w1, b1, w2, b2, wc, bc = params
    wc_pad = jnp.zeros((P, C_PAD), jnp.float32).at[:, :C].set(wc)
    bc_pad = jnp.zeros((1, C_PAD), jnp.float32).at[:, :C].set(bc)
    wa = jnp.concatenate([wf, w1], axis=1).astype(jnp.bfloat16)       # [128, 640]
    wb = jnp.concatenate([w2, wc_pad], axis=1).astype(jnp.bfloat16)   # [512, 640]
    biases = jnp.concatenate([bf, b1, b2, bc_pad], axis=1)            # [1, 1280] f32
    return wa, wb, biases


def biolingual_forward(x, packed):
    """x: [B, T] float32 raw mono audio (PyTorch module squeezes [B,1,T]).

    Returns (mean_embedding [B, P], logits [B, C])."""
    wa, wb, biases = packed
    b, t = x.shape
    n_frames = t // W
    frames = x[:, : n_frames * W].reshape(b * n_frames, W)

    args = (frames, wa, wb, biases)
    out = pl.pallas_call(
        _make_kernel(b, n_frames),
        grid=(1,),
        in_specs=[_full_spec(a.shape) for a in args],
        out_specs=_full_spec((b, P + C_PAD)),
        out_shape=jax.ShapeDtypeStruct((b, P + C_PAD), jnp.float32),
        compiler_params=pltpu.CompilerParams(
            dimension_semantics=("arbitrary",)),
    )(*args)

    emb = out[:, :P]
    logits = out[:, P:P + C]
    return emb, logits


if __name__ == "__main__":
    key = jax.random.PRNGKey(0)
    k_x, k_p = jax.random.split(key)
    x = jax.random.normal(k_x, (B, T), jnp.float32)   # raw audio [B, T]
    params = init_params(k_p)
    packed = pack_params(params)                      # one-time packing

    emb, logits = biolingual_forward(x, packed)
    jax.block_until_ready((emb, logits))

    assert emb.shape == (B, P) and logits.shape == (B, C)
    # embedding is L2-normalized
    norms = jnp.linalg.norm(emb, axis=-1)
    assert bool(jnp.all(jnp.abs(norms - 1.0) < 1e-3))
    print("KERNEL_OK")
</pallas_src>

<mosaic_0001>
module attributes {stable_mosaic.version = 11 : i64} {
  func.func @kernel(%arg0: i32, %arg1: memref<16x128xf32, #tpu.memory_space<vmem>>, %arg2: memref<128x640xbf16, #tpu.memory_space<vmem>>, %arg3: memref<512x640xbf16, #tpu.memory_space<vmem>>, %arg4: memref<1x1280xf32, #tpu.memory_space<vmem>>, %arg5: memref<2x640xf32, #tpu.memory_space<vmem>>) attributes {dimension_semantics = [#tpu.dimension_semantics<arbitrary>], iteration_bounds = array<i64: 1>, scalar_prefetch = 0 : i64, scratch_operands = 0 : i64, tpu.core_type = #tpu.core_type<tc>, window_params = [{pipeline_mode = #tpu.pipeline_mode<synchronous>, transform_indices = @transform_0, window_bounds = array<i64: 16, 128>}, {pipeline_mode = #tpu.pipeline_mode<synchronous>, transform_indices = @transform_1, window_bounds = array<i64: 128, 640>}, {pipeline_mode = #tpu.pipeline_mode<synchronous>, transform_indices = @transform_2, window_bounds = array<i64: 512, 640>}, {pipeline_mode = #tpu.pipeline_mode<synchronous>, transform_indices = @transform_3, window_bounds = array<i64: 1, 1280>}, {pipeline_mode = #tpu.pipeline_mode<synchronous>, transform_indices = @transform_4, window_bounds = array<i64: 2, 640>}]} {
    %c0 = arith.constant 0 : index
    %c0_0 = arith.constant 0 : index
    %0 = vector.load %arg2[%c0, %c0_0] : memref<128x640xbf16, #tpu.memory_space<vmem>>, vector<128x128xbf16>
    %c0_1 = arith.constant 0 : index
    %c128 = arith.constant 128 : index
    %1 = vector.load %arg2[%c0_1, %c128] : memref<128x640xbf16, #tpu.memory_space<vmem>>, vector<128x512xbf16>
    %c0_2 = arith.constant 0 : index
    %c0_3 = arith.constant 0 : index
    %2 = vector.load %arg3[%c0_2, %c0_3] : memref<512x640xbf16, #tpu.memory_space<vmem>>, vector<512x512xbf16>
    %c0_4 = arith.constant 0 : index
    %c512 = arith.constant 512 : index
    %3 = vector.load %arg3[%c0_4, %c512] : memref<512x640xbf16, #tpu.memory_space<vmem>>, vector<512x128xbf16>
    %c0_5 = arith.constant 0 : index
    %c0_6 = arith.constant 0 : index
    %4 = vector.load %arg4[%c0_5, %c0_6] : memref<1x1280xf32, #tpu.memory_space<vmem>>, vector<1x128xf32>
    %c0_7 = arith.constant 0 : index
    %c128_8 = arith.constant 128 : index
    %5 = vector.load %arg4[%c0_7, %c128_8] : memref<1x1280xf32, #tpu.memory_space<vmem>>, vector<1x512xf32>
    %c0_9 = arith.constant 0 : index
    %c640 = arith.constant 640 : index
    %6 = vector.load %arg4[%c0_9, %c640] : memref<1x1280xf32, #tpu.memory_space<vmem>>, vector<1x512xf32>
    %c0_10 = arith.constant 0 : index
    %c1152 = arith.constant 1152 : index
    %7 = vector.load %arg4[%c0_10, %c1152] : memref<1x1280xf32, #tpu.memory_space<vmem>>, vector<1x128xf32>
    %c0_11 = arith.constant 0 : index
    %c0_12 = arith.constant 0 : index
    %8 = vector.load %arg1[%c0_11, %c0_12] : memref<16x128xf32, #tpu.memory_space<vmem>>, vector<16x128xf32>
    %9 = arith.truncf %8 : vector<16x128xf32> to vector<16x128xbf16>
    %cst = arith.constant dense<0.000000e+00> : vector<16x128xf32>
    %10 = tpu.matmul %9, %0, %cst {dimension_numbers = #tpu.dot_dimension_numbers<[1], [0], [0], [1], [0, 0, 1, 1], [], []>} : vector<16x128xbf16>, vector<128x128xbf16>, vector<16x128xf32> -> vector<16x128xf32>
    %11 = vector.broadcast %4 : vector<1x128xf32> to vector<16x128xf32>
    %12 = arith.addf %10, %11 : vector<16x128xf32>
    %cst_13 = arith.constant 0.000000e+00 : f32
    %13 = vector.broadcast %cst_13 : f32 to vector<16x128xf32>
    %14 = arith.maximumf %12, %13 : vector<16x128xf32>
    %15 = vector.shape_cast %14 : vector<16x128xf32> to vector<2x8x128xf32>
    %cst_14 = arith.constant dense<0.000000e+00> : vector<2x128xf32>
    %16 = vector.multi_reduction <add>, %15, %cst_14 [1] : vector<2x8x128xf32> to vector<2x128xf32>
    %cst_15 = arith.constant 8.000000e+00 : f32
    %17 = vector.broadcast %cst_15 : f32 to vector<2x128xf32>
    %18 = arith.divf %16, %17 : vector<2x128xf32>
    %19 = arith.truncf %18 : vector<2x128xf32> to vector<2x128xbf16>
    %cst_16 = arith.constant dense<0.000000e+00> : vector<2x512xf32>
    %20 = tpu.matmul %19, %1, %cst_16 {dimension_numbers = #tpu.dot_dimension_numbers<[1], [0], [0], [1], [0, 0, 1, 1], [], []>} : vector<2x128xbf16>, vector<128x512xbf16>, vector<2x512xf32> -> vector<2x512xf32>
    %21 = vector.broadcast %5 : vector<1x512xf32> to vector<2x512xf32>
    %22 = arith.addf %20, %21 : vector<2x512xf32>
    %cst_17 = arith.constant 0.000000e+00 : f32
    %23 = vector.broadcast %cst_17 : f32 to vector<2x512xf32>
    %24 = arith.maximumf %22, %23 : vector<2x512xf32>
    %25 = arith.truncf %24 : vector<2x512xf32> to vector<2x512xbf16>
    %cst_18 = arith.constant dense<0.000000e+00> : vector<2x512xf32>
    %26 = tpu.matmul %25, %2, %cst_18 {dimension_numbers = #tpu.dot_dimension_numbers<[1], [0], [0], [1], [0, 0, 1, 1], [], []>} : vector<2x512xbf16>, vector<512x512xbf16>, vector<2x512xf32> -> vector<2x512xf32>
    %27 = vector.broadcast %6 : vector<1x512xf32> to vector<2x512xf32>
    %28 = arith.addf %26, %27 : vector<2x512xf32>
    %29 = arith.mulf %28, %28 : vector<2x512xf32>
    %cst_19 = arith.constant dense<0.000000e+00> : vector<2xf32>
    %30 = vector.multi_reduction <add>, %29, %cst_19 [1] : vector<2x512xf32> to vector<2xf32>
    %31 = vector.shape_cast %30 : vector<2xf32> to vector<2x1xf32>
    %cst_20 = arith.constant 1.000000e-24 : f32
    %32 = vector.broadcast %cst_20 : f32 to vector<2x1xf32>
    %33 = arith.maximumf %31, %32 : vector<2x1xf32>
    %34 = math.rsqrt %33 : vector<2x1xf32>
    %35 = vector.broadcast %34 : vector<2x1xf32> to vector<2x512xf32>
    %36 = arith.mulf %28, %35 : vector<2x512xf32>
    %37 = arith.truncf %36 : vector<2x512xf32> to vector<2x512xbf16>
    %cst_21 = arith.constant dense<0.000000e+00> : vector<2x128xf32>
    %38 = tpu.matmul %37, %3, %cst_21 {dimension_numbers = #tpu.dot_dimension_numbers<[1], [0], [0], [1], [0, 0, 1, 1], [], []>} : vector<2x512xbf16>, vector<512x128xbf16>, vector<2x128xf32> -> vector<2x128xf32>
    %39 = vector.broadcast %7 : vector<1x128xf32> to vector<2x128xf32>
    %40 = arith.addf %38, %39 : vector<2x128xf32>
    %c0_22 = arith.constant 0 : index
    %c0_23 = arith.constant 0 : index
    %41 = vector.load %arg5[%c0_22, %c0_23] : memref<2x640xf32, #tpu.memory_space<vmem>>, vector<2x512xf32>
    tpu.vector_store %arg5[%c0_22, %c0_23], %36 {strides = array<i32>} : memref<2x640xf32, #tpu.memory_space<vmem>>, vector<2x512xf32>,
    %c0_24 = arith.constant 0 : index
    %c512_25 = arith.constant 512 : index
    %42 = vector.load %arg5[%c0_24, %c512_25] : memref<2x640xf32, #tpu.memory_space<vmem>>, vector<2x128xf32>
    tpu.vector_store %arg5[%c0_24, %c512_25], %40 {strides = array<i32>} : memref<2x640xf32, #tpu.memory_space<vmem>>, vector<2x128xf32>,
    return
  }
  func.func @transform_0(%arg0: i32) -> (i32, i32) {
    %c0_i32 = arith.constant 0 : i32
    %c0_i32_0 = arith.constant 0 : i32
    %c0_i32_1 = arith.constant 0 : i32
    return %c0_i32, %c0_i32_0 : i32, i32
  }
  func.func @transform_1(%arg0: i32) -> (i32, i32) {
    %c0_i32 = arith.constant 0 : i32
    %c0_i32_0 = arith.constant 0 : i32
    %c0_i32_1 = arith.constant 0 : i32
    return %c0_i32, %c0_i32_0 : i32, i32
  }
  func.func @transform_2(%arg0: i32) -> (i32, i32) {
    %c0_i32 = arith.constant 0 : i32
    %c0_i32_0 = arith.constant 0 : i32
    %c0_i32_1 = arith.constant 0 : i32
    return %c0_i32, %c0_i32_0 : i32, i32
  }
  func.func @transform_3(%arg0: i32) -> (i32, i32) {
    %c0_i32 = arith.constant 0 : i32
    %c0_i32_0 = arith.constant 0 : i32
    %c0_i32_1 = arith.constant 0 : i32
    return %c0_i32, %c0_i32_0 : i32, i32
  }
  func.func @transform_4(%arg0: i32) -> (i32, i32) {
    %c0_i32 = arith.constant 0 : i32
    %c0_i32_0 = arith.constant 0 : i32
    %c0_i32_1 = arith.constant 0 : i32
    return %c0_i32, %c0_i32_0 : i32, i32
  }
}

</mosaic_0001>

<bundles_post_ra>
// kernel: tpu_custom_call.1
= control target key start
LH: loop header
LB: loop body
LE: loop exit
PB: predicated region body
PF: predicated region fallthrough
CT: control target
= control target key end

     0   :  { %9 = vsyncpa [#allocation3], 0  ;;  %s2701_s0 = inlined_call_operand.hbm [shape: f32[16,128], index: 0, kind: input, shape index: {}]   ;;  %s2702_s1 = inlined_call_operand.hbm [shape: bf16[128,640], index: 1, kind: input, shape index: {}]   ;;  %s2703_s2 = inlined_call_operand.hbm [shape: bf16[512,640], index: 2, kind: input, shape index: {}]   ;;  %s2704_s3 = inlined_call_operand.vmem [shape: f32[1,1280], index: 3, kind: input, shape index: {}]   ;;  %s2705_s4 = inlined_call_operand.hbm [shape: f32[2,640], index: 4, kind: output, shape index: {}]  }
   0x1   :  { %10 = vsyncpa [#allocation6], 0 }
   0x2   :  { %11 = vsyncpa [#allocation4], 0  ;;  %s2542_s15 = smov [#allocation5]   ;;  %s2448_s19 = scalar_lea.hbm %s2702_s1, 5120 }
   0x3   :  { %s29_s16 = sshll.u32 %s2542_s15, 4  ;;  %p2449_p0 = scmp.ne.s32.totalorder %s2702_s1, %s2448_s19  ;;  %s30_s16 = int_to_ptr.vmem [resolvable:$true] %s29_s16 }
   0x4   :  { %p2452_p1 = scmp.lt.u32.totalorder %s2448_s19, %s2702_s1 }
   0x6   :  { %p2454_p2 = pnand %p2452_p1, %p2449_p0 }
   0x8   :  { %2457 = shalt.err (!%p2454_p2)
}
   0x9   :  { %s2458_s24 = scalar_lea.vmem %s30_s16, 5120  ;;  %p2463_p4 = scmp.lt.s32.totalorder %s30_s16, %s30_s16 }
   0xa   :  { %p2459_p3 = scmp.ne.s32.totalorder %s30_s16, %s2458_s24  ;;  %p2464_p5 = scmp.lt.s32.totalorder %s2458_s24, %s2458_s24 }
   0xc   :  { %p2465_p6 = por %p2464_p5, %p2463_p4 }
   0xe   :  { %p2466_p7 = pnand %p2465_p6, %p2459_p3 }
  0x10   :  { %2469 = shalt.err (!%p2466_p7)
}
  0x11   :  { %s2543_s25 = smov 320   ;;  %s2544_s26 = smov 20  }
  0x12   :  { %35 = dma.hbm_to_vmem [thread:$0]  %s2702_s1, 5120, %s30_s16, [#allocation6], %s2543_s25, %s2543_s25, %s2544_s26  }
  0x13   :  { %s2545_s29 = smov [#allocation2]   ;;  %s2470_s7 = scalar_lea.hbm %s2701_s0, 256 }
  0x14   :  { %s17_s30 = sshll.u32 %s2545_s29, 4  ;;  %p2471_p8 = scmp.ne.s32.totalorder %s2701_s0, %s2470_s7  ;;  %s18_s30 = int_to_ptr.vmem [resolvable:$true] %s17_s30 }
  0x15   :  { %p2474_p9 = scmp.lt.u32.totalorder %s2470_s7, %s2701_s0 }
  0x17   :  { %p2476_p10 = pnand %p2474_p9, %p2471_p8 }
  0x19   :  { %2479 = shalt.err (!%p2476_p10)
}
  0x1a   :  { %s2480_s12 = scalar_lea.vmem %s18_s30, 256  ;;  %p2485_p12 = scmp.lt.s32.totalorder %s18_s30, %s18_s30 }
  0x1b   :  { %p2481_p11 = scmp.ne.s32.totalorder %s18_s30, %s2480_s12  ;;  %p2486_p13 = scmp.lt.s32.totalorder %s2480_s12, %s2480_s12 }
  0x1d   :  { %p2487_p0 = por %p2486_p13, %p2485_p12 }
  0x1f   :  { %p2488_p1 = pnand %p2487_p0, %p2481_p11 }
  0x21   :  { %2491 = shalt.err (!%p2488_p1)
}
  0x22   :  { %s2546_s1 = smov 128   ;;  %s2547_s13 = smov 8  }
  0x23   :  { %23 = dma.hbm_to_vmem [thread:$0]  %s2701_s0, 256, %s18_s30, [#allocation3], %s2546_s1, %s2546_s1, %s2547_s13  }
  0x24   :  { %s2548_s16 = smov [#allocation7]   ;;  %s2492_s20 = scalar_lea.hbm %s2703_s2, 20480 }
  0x25   :  { %s41_s17 = sshll.u32 %s2548_s16, 4  ;;  %p2493_p2 = scmp.ne.s32.totalorder %s2703_s2, %s2492_s20  ;;  %s42_s17 = int_to_ptr.vmem [resolvable:$true] %s41_s17 }
  0x26   :  { %p2496_p3 = scmp.lt.u32.totalorder %s2492_s20, %s2703_s2 }
  0x28   :  { %p2498_p4 = pnand %p2496_p3, %p2493_p2 }
  0x2a   :  { %2501 = shalt.err (!%p2498_p4)
}
  0x2b   :  { %s2502_s27 = scalar_lea.vmem %s42_s17, 20480  ;;  %p2507_p6 = scmp.lt.s32.totalorder %s42_s17, %s42_s17 }
  0x2c   :  { %p2503_p5 = scmp.ne.s32.totalorder %s42_s17, %s2502_s27  ;;  %p2508_p7 = scmp.lt.s32.totalorder %s2502_s27, %s2502_s27 }
  0x2e   :  { %p2509_p8 = por %p2508_p7, %p2507_p6 }
  0x30   :  { %p2510_p9 = pnand %p2509_p8, %p2503_p5 }
  0x32   :  { %2513 = shalt.err (!%p2510_p9)
}
  0x33   :  { %47 = dma.hbm_to_vmem [thread:$0]  %s2703_s2, 20480, %s42_s17, [#allocation6], %s2543_s25, %s2543_s25, %s2544_s26  }
  0x34   :  { %2536 = dma.done.wait [#allocation3], 256  }
  0x35   :  { %2537 = vsyncadd [#allocation3], 4294967040 }
  0x36   :  { %2538 = dma.done.wait [#allocation6], 25600  }
  0x37   :  { %2539 = vsyncadd [#allocation6], 4294941696  ;;  %v2549_v0 = vmov 0.0   ;;  %vm2550_vm0 = vmmov 0   ;;  %v2166_v1 = vld [vmem:[#allocation5] ss:$20 sps:$4 sm:$0xff]  }
  0x38   :  { %2122 = vmatprep.subr.bf16.mxu0 %v2549_v0  ;;  %2138 = vmatprep.mubr.msk.bf16.mxu0 %vm2550_vm0, %v2549_v0  ;;  %v2167_v2 = vld [vmem:[#allocation5 + $0x28] ss:$20 sps:$4 sm:$0xff]   ;;  %v2168_v3 = vld [vmem:[#allocation5 + $0x50] ss:$20 sps:$4 sm:$0xff]   ;;  %v2169_v5 = vld [vmem:[#allocation5 + $0x78] ss:$20 sps:$4 sm:$0xff]  }
  0x39   :  { %2123 = vmatpush3.bf16.msra.mxu0 %v2166_v1  ;;  %v2174_v4 = vld [vmem:[#allocation5 + $0x8] ss:$20 sps:$4 sm:$0xff]   ;;  %v2179_v6 = vld [vmem:[#allocation5 + $0x4] ss:$20 sps:$4 sm:$0xff]   ;;  %v2170_v7 = vld [vmem:[#allocation5 + $0xa0] ss:$20 sps:$4 sm:$0xff]  }
  0x3a   :  { %2124 = vmatprep.subr.bf16.mxu0 %v2549_v0  ;;  %610 = vmatprep.subr.bf16.mxu1 %v2174_v4  ;;  %v2171_v8 = vld [vmem:[#allocation5 + $0xc8] ss:$20 sps:$4 sm:$0xff]   ;;  %v2172_v9 = vld [vmem:[#allocation5 + $0xf0] ss:$20 sps:$4 sm:$0xff]   ;;  %v2173_v10 = vld [vmem:[#allocation5 + $0x118] ss:$20 sps:$4 sm:$0xff]  }
  0x3b   :  { %611 = vmatpush1.bf16.msra.mxu1 %v2179_v6  ;;  %v304_v11 = vld [vmem:[#allocation2] sm:$0xff]  ;;  %v305_v12 = vld [vmem:[#allocation2 + $0x8] sm:$0xff]  ;;  %v2176_v14 = vld [vmem:[#allocation5 + $0xc] ss:$20 sps:$4 sm:$0xff]   ;;  %v2551_v44 = vmov 0   ;;  %vm446_vm1 = vcmask 1041409  }
  0x3c   :  { %v2178_v13 = vld [vmem:[#allocation5 + $0x10] ss:$20 sps:$4 sm:$0xff]   ;;  %v306_v15 = vpack.c.bf16 %v305_v12, %v304_v11  ;;  %v2184_v17 = vld [vmem:[#allocation5 + $0x38] ss:$20 sps:$4 sm:$0xff]   ;;  %v2182_v18 = vld [vmem:[#allocation5 + $0x34] ss:$20 sps:$4 sm:$0xff]   ;;  %642 = vmatprep.mubr.bf16.mxu1 %v2551_v44 }
  0x3d   :  { %2125 = vmatpush3.bf16.msra.mxu0 %v2167_v2  ;;  %v2180_v16 = vld [vmem:[#allocation5 + $0x30] ss:$20 sps:$4 sm:$0xff]   ;;  %v2185_v19 = vld [vmem:[#allocation5 + $0x2c] ss:$20 sps:$4 sm:$0xff]   ;;  %v2191_v23 = vld [vmem:[#allocation5 + $0x54] ss:$20 sps:$4 sm:$0xff]  }
  0x3e   :  { %2126 = vmatprep.subr.bf16.mxu0 %v2549_v0  ;;  %612 = vmatprep.subr.bf16.mxu1 %v2180_v16  ;;  %v2186_v20 = vld [vmem:[#allocation5 + $0x58] ss:$20 sps:$4 sm:$0xff]   ;;  %v2190_v21 = vld [vmem:[#allocation5 + $0x60] ss:$20 sps:$4 sm:$0xff]   ;;  %v2188_v22 = vld [vmem:[#allocation5 + $0x5c] ss:$20 sps:$4 sm:$0xff]  }
  0x3f   :  { %613 = vmatpush1.bf16.msra.mxu1 %v2185_v19  ;;  %v2192_v24 = vld [vmem:[#allocation5 + $0x80] ss:$20 sps:$4 sm:$0xff]   ;;  %v2196_v25 = vld [vmem:[#allocation5 + $0x88] ss:$20 sps:$4 sm:$0xff]   ;;  %v2194_v26 = vld [vmem:[#allocation5 + $0x84] ss:$20 sps:$4 sm:$0xff]  }
  0x40   :  { %614 = vmatprep.subr.bf16.mxu1 %v2186_v20  ;;  %v2197_v27 = vld [vmem:[#allocation5 + $0x7c] ss:$20 sps:$4 sm:$0xff]   ;;  %v2200_v30 = vld [vmem:[#allocation5 + $0xac] ss:$20 sps:$4 sm:$0xff]   ;;  %v2203_v31 = vld [vmem:[#allocation5 + $0xa4] ss:$20 sps:$4 sm:$0xff]  }
  0x41   :  { %2127 = vmatpush3.bf16.msra.mxu0 %v2168_v3  ;;  %v2198_v28 = vld [vmem:[#allocation5 + $0xa8] ss:$20 sps:$4 sm:$0xff]   ;;  %v2202_v29 = vld [vmem:[#allocation5 + $0xb0] ss:$20 sps:$4 sm:$0xff]   ;;  %v2208_v33 = vld [vmem:[#allocation5 + $0xd8] ss:$20 sps:$4 sm:$0xff]  }
  0x42   :  { %2128 = vmatprep.subr.bf16.mxu0 %v2549_v0  ;;  %v2204_v32 = vld [vmem:[#allocation5 + $0xd0] ss:$20 sps:$4 sm:$0xff]   ;;  %v2206_v34 = vld [vmem:[#allocation5 + $0xd4] ss:$20 sps:$4 sm:$0xff]   ;;  %v2209_v35 = vld [vmem:[#allocation5 + $0xcc] ss:$20 sps:$4 sm:$0xff]  }
  0x43   :  { %615 = vmatpush1.bf16.msra.mxu1 %v2191_v23  ;;  %v2210_v36 = vld [vmem:[#allocation5 + $0xf8] ss:$20 sps:$4 sm:$0xff]   ;;  %v2214_v37 = vld [vmem:[#allocation5 + $0x100] ss:$20 sps:$4 sm:$0xff]   ;;  %v2212_v38 = vld [vmem:[#allocation5 + $0xfc] ss:$20 sps:$4 sm:$0xff]  }
  0x44   :  { %616 = vmatprep.subr.bf16.mxu1 %v2192_v24  ;;  %v2215_v39 = vld [vmem:[#allocation5 + $0xf4] ss:$20 sps:$4 sm:$0xff]   ;;  %v2218_v42 = vld [vmem:[#allocation5 + $0x124] ss:$20 sps:$4 sm:$0xff]   ;;  %v2221_v43 = vld [vmem:[#allocation5 + $0x11c] ss:$20 sps:$4 sm:$0xff]  }
  0x45   :  { %2129 = vmatpush3.bf16.msra.mxu0 %v2169_v5  ;;  %v2216_v40 = vld [vmem:[#allocation5 + $0x120] ss:$20 sps:$4 sm:$0xff]   ;;  %v2220_v41 = vld [vmem:[#allocation5 + $0x128] ss:$20 sps:$4 sm:$0xff]   ;;  %v2224_v45 = vld [vmem:[#allocation7 + $0x4] ss:$20 sps:$4 sm:$0xff]  }
  0x46   :  { %2130 = vmatprep.subr.bf16.mxu0 %v2549_v0  ;;  %v2227_v46 = vld [vmem:[#allocation7 + $0xc] ss:$20 sps:$4 sm:$0xff]   ;;  %v1867_v47 = vld [vmem:[%s2704_s3] ss:$0 sm:$0xff]  ;;  %v2225_v12 = vld [vmem:[#allocation7 + $0x8] ss:$20 sps:$4 sm:$0xff]  }
  0x47   :  { %617 = vmatpush1.bf16.msra.mxu1 %v2197_v27  ;;  %v2222_v11 = vld [vmem:[#allocation7] ss:$20 sps:$4 sm:$0xff]   ;;  %v2228_v16 = vld [vmem:[#allocation7 + $0x28] ss:$20 sps:$4 sm:$0xff]   ;;  %v2234_v20 = vld [vmem:[#allocation7 + $0x50] ss:$20 sps:$4 sm:$0xff]  }
  0x48   :  { %618 = vmatprep.subr.bf16.mxu1 %v2198_v28  ;;  %v2239_v19 = vld [vmem:[#allocation7 + $0x5c] ss:$20 sps:$4 sm:$0xff]   ;;  %v2245_v23 = vld [vmem:[#allocation7 + $0x84] ss:$20 sps:$4 sm:$0xff]   ;;  %v2251_v27 = vld [vmem:[#allocation7 + $0xac] ss:$20 sps:$4 sm:$0xff]  }
  0x49   :  { %2131 = vmatpush3.bf16.msra.mxu0 %v2170_v7  ;;  %v2240_v24 = vld [vmem:[#allocation7 + $0x78] ss:$20 sps:$4 sm:$0xff]   ;;  %v2246_v28 = vld [vmem:[#allocation7 + $0xa0] ss:$20 sps:$4 sm:$0xff]   ;;  %vm1529_vm2 = vcmask 1041408   ;;  %s2553_s8 = smov [#allocation8]  }
  0x4a   :  { %2132 = vmatprep.subr.bf16.mxu0 %v2549_v0  ;;  %s1857_s9 = sshll.u32 %s2553_s8, 4  ;;  %s1858_s9 = int_to_ptr.vmem [resolvable:$true] %s1857_s9 }
  0x4b   :  { %619 = vmatpush1.bf16.msra.mxu1 %v2203_v31  ;;  %v2257_v31 = vld [vmem:[#allocation7 + $0xd4] ss:$20 sps:$4 sm:$0xff]   ;;  %s2514_s10 = scalar_lea.vmem %s1858_s9, 160  ;;  %p2519_p11 = scmp.lt.s32.totalorder %s1858_s9, %s1858_s9 }
  0x4c   :  { %620 = vmatprep.subr.bf16.mxu1 %v2204_v32  ;;  %v2252_v32 = vld [vmem:[#allocation7 + $0xc8] ss:$20 sps:$4 sm:$0xff]   ;;  %p2515_p10 = scmp.ne.s32.totalorder %s1858_s9, %s2514_s10  ;;  %p2520_p12 = scmp.lt.s32.totalorder %s2514_s10, %s2514_s10 }
  0x4d   :  { %2133 = vmatpush3.bf16.msra.mxu0 %v2171_v8 }
  0x4e   :  { %2134 = vmatprep.subr.bf16.mxu0 %v2549_v0  ;;  %p2521_p13 = por %p2520_p12, %p2519_p11 }
  0x4f   :  { %621 = vmatpush1.bf16.msra.mxu1 %v2209_v35  ;;  %v2263_v35 = vld [vmem:[#allocation7 + $0xfc] ss:$20 sps:$4 sm:$0xff]  }
  0x50   :  { %622 = vmatprep.subr.bf16.mxu1 %v2210_v36  ;;  %v2258_v36 = vld [vmem:[#allocation7 + $0xf0] ss:$20 sps:$4 sm:$0xff]   ;;  %p2522_p0 = pnand %p2521_p13, %p2515_p10 }
  0x51   :  { %2135 = vmatpush3.bf16.msra.mxu0 %v2172_v9 }
  0x52   :  { %2136 = vmatprep.subr.bf16.mxu0 %v2549_v0 }
  0x53   :  { %623 = vmatpush1.bf16.msra.mxu1 %v2215_v39  ;;  %v2269_v39 = vld [vmem:[#allocation7 + $0x124] ss:$20 sps:$4 sm:$0xff]  }
  0x54   :  { %624 = vmatprep.subr.bf16.mxu1 %v2216_v40  ;;  %v2264_v40 = vld [vmem:[#allocation7 + $0x118] ss:$20 sps:$4 sm:$0xff]  }
  0x55   :  { %2137 = vmatpush3.bf16.msra.mxu0 %v2173_v10 }
  0x56   :  { %651 = vmatprep.subr.bf16.mxu0 %v2178_v13 }
  0x57   :  { %625 = vmatpush1.bf16.msra.mxu1 %v2221_v43  ;;  %v2275_v43 = vld [vmem:[#allocation7 + $0x14c] ss:$20 sps:$4 sm:$0xff]  }
  0x58   :  { %2139 = vmatmul.mubr.bf16.vlgmr.msra.gmra.mrb[0].mxu0 %v306_v15  ;;  %1361 = vmatprep.subr.bf16.mxu1 %v2224_v45  ;;  %v2233_v15 = vld [vmem:[#allocation7 + $0x34] ss:$20 sps:$4 sm:$0xff]  }
  0x59   :  { %652 = vmatpush1.bf16.msra.mxu0 %v2176_v14  ;;  %683 = vmatprep.mubr.bf16.mxu0 %v2551_v44  ;;  %v2230_v14 = vld [vmem:[#allocation7 + $0x2c] ss:$20 sps:$4 sm:$0xff]   ;;  %v2273_v45 = vld [vmem:[#allocation7 + $0x148] ss:$20 sps:$4 sm:$0xff]  }
  0x5a   :  { %653 = vmatprep.subr.bf16.mxu0 %v2184_v17  ;;  %v2231_v17 = vld [vmem:[#allocation7 + $0x30] ss:$20 sps:$4 sm:$0xff]   ;;  %v2270_v44 = vld [vmem:[#allocation7 + $0x140] ss:$20 sps:$4 sm:$0xff]  }
  0x5d   :  { %654 = vmatpush1.bf16.msra.mxu0 %v2182_v18  ;;  %v2236_v18 = vld [vmem:[#allocation7 + $0x54] ss:$20 sps:$4 sm:$0xff]  }
  0x5e   :  { %655 = vmatprep.subr.bf16.mxu0 %v2190_v21  ;;  %v2237_v21 = vld [vmem:[#allocation7 + $0x58] ss:$20 sps:$4 sm:$0xff]  }
  0x61   :  { %656 = vmatpush1.bf16.msra.mxu0 %v2188_v22  ;;  %v2242_v22 = vld [vmem:[#allocation7 + $0x7c] ss:$20 sps:$4 sm:$0xff]  }
  0x62   :  { %657 = vmatprep.subr.bf16.mxu0 %v2196_v25  ;;  %v2243_v25 = vld [vmem:[#allocation7 + $0x80] ss:$20 sps:$4 sm:$0xff]  }
  0x65   :  { %658 = vmatpush1.bf16.msra.mxu0 %v2194_v26  ;;  %v2248_v26 = vld [vmem:[#allocation7 + $0xa4] ss:$20 sps:$4 sm:$0xff]  }
  0x66   :  { %659 = vmatprep.subr.bf16.mxu0 %v2202_v29  ;;  %v2249_v29 = vld [vmem:[#allocation7 + $0xa8] ss:$20 sps:$4 sm:$0xff]  }
  0x69   :  { %660 = vmatpush1.bf16.msra.mxu0 %v2200_v30  ;;  %v2254_v30 = vld [vmem:[#allocation7 + $0xcc] ss:$20 sps:$4 sm:$0xff]  }
  0x6a   :  { %661 = vmatprep.subr.bf16.mxu0 %v2208_v33  ;;  %v2255_v33 = vld [vmem:[#allocation7 + $0xd0] ss:$20 sps:$4 sm:$0xff]  }
  0x6d   :  { %662 = vmatpush1.bf16.msra.mxu0 %v2206_v34  ;;  %v2260_v34 = vld [vmem:[#allocation7 + $0xf4] ss:$20 sps:$4 sm:$0xff]  }
  0x6e   :  { %663 = vmatprep.subr.bf16.mxu0 %v2214_v37  ;;  %v2261_v37 = vld [vmem:[#allocation7 + $0xf8] ss:$20 sps:$4 sm:$0xff]  }
  0x71   :  { %664 = vmatpush1.bf16.msra.mxu0 %v2212_v38  ;;  %v2266_v38 = vld [vmem:[#allocation7 + $0x11c] ss:$20 sps:$4 sm:$0xff]  }
  0x72   :  { %665 = vmatprep.subr.bf16.mxu0 %v2220_v41  ;;  %v2267_v41 = vld [vmem:[#allocation7 + $0x120] ss:$20 sps:$4 sm:$0xff]  }
  0x75   :  { %666 = vmatpush1.bf16.msra.mxu0 %v2218_v42  ;;  %v2272_v42 = vld [vmem:[#allocation7 + $0x144] ss:$20 sps:$4 sm:$0xff]  }
  0x76   :  { %1443 = vmatprep.subr.bf16.mxu0 %v2227_v46  ;;  %v2278_v46 = vld [vmem:[#allocation7 + $0x16c] ss:$20 sps:$4 sm:$0xff]  }
 0x12b   :  { %v395_v48 = vpop.f32.mrb[0].mxu0 }
 0x12c   :  { %v396_v49 = vadd.f32 %v1867_v47, %v395_v48  ;;  %v2140_v50 = vpop.f32.mrb[1].mxu0  ;;  %v2276_v48 = vld [vmem:[#allocation7 + $0x168] ss:$20 sps:$4 sm:$0xff]  }
 0x12d   :  { %v398_v51 = vpop.f32.mrb[2].mxu0  ;;  %v2284_v50 = vld [vmem:[#allocation7 + $0x194] ss:$20 sps:$4 sm:$0xff]  }
 0x12e   :  { %v402_v52 = vmax.f32 %v396_v49, 0.0  ;;  %v399_v53 = vadd.f32 %v1867_v47, %v398_v51  ;;  %v2141_v54 = vpop.f32.mrb[3].mxu0  ;;  %v2281_v47 = vld [vmem:[#allocation7 + $0x174] ss:$20 sps:$4 sm:$0xff]   ;;  %v2279_v49 = vld [vmem:[#allocation7 + $0x170] ss:$20 sps:$4 sm:$0xff]  }
 0x12f   :  { %v2287_v51 = vld [vmem:[#allocation7 + $0x19c] ss:$20 sps:$4 sm:$0xff]  }
 0x130   :  { %v404_v55 = vrot.slane %v402_v52, 4  ;;  %v403_v56 = vmax.f32 %v399_v53, 0.0  ;;  %v2285_v53 = vld [vmem:[#allocation7 + $0x198] ss:$20 sps:$4 sm:$0xff]   ;;  %v2290_v54 = vld [vmem:[#allocation7 + $0x1bc] ss:$20 sps:$4 sm:$0xff]  }
 0x132   :  { %v405_v57 = vadd.f32 %v404_v55, %v402_v52  ;;  %v410_v58 = vrot.slane %v403_v56, 4  ;;  %v2282_v52 = vld [vmem:[#allocation7 + $0x190] ss:$20 sps:$4 sm:$0xff]  }
 0x133   :  { %v2293_v55 = vld [vmem:[#allocation7 + $0x1c4] ss:$20 sps:$4 sm:$0xff]  }
 0x134   :  { %v406_v59 = vrot.slane %v405_v57, 2  ;;  %v411_v60 = vadd.f32 %v410_v58, %v403_v56  ;;  %v2288_v56 = vld [vmem:[#allocation7 + $0x1b8] ss:$20 sps:$4 sm:$0xff]  }
 0x135   :  { %v2296_v58 = vld [vmem:[#allocation7 + $0x1e4] ss:$20 sps:$4 sm:$0xff]  }
 0x136   :  { %v407_v61 = vadd.f32 %v406_v59, %v405_v57  ;;  %v412_v62 = vrot.slane %v411_v60, 2  ;;  %v2291_v57 = vld [vmem:[#allocation7 + $0x1c0] ss:$20 sps:$4 sm:$0xff]  }
 0x137   :  { %v2299_v59 = vld [vmem:[#allocation7 + $0x1ec] ss:$20 sps:$4 sm:$0xff]  }
 0x138   :  { %v408_v63 = vrot.slane %v407_v61, 1  ;;  %v413_v0 = vadd.f32 %v412_v62, %v411_v60  ;;  %v2294_v60 = vld [vmem:[#allocation7 + $0x1e0] ss:$20 sps:$4 sm:$0xff]  }
 0x139   :  { %v2302_v62 = vld [vmem:[#allocation7 + $0x20c] ss:$20 sps:$4 sm:$0xff]  }
 0x13a   :  { %v409_v1 = vadd.f32 %v408_v63, %v407_v61  ;;  %v414_v2 = vrot.slane %v413_v0, 1  ;;  %v2297_v61 = vld [vmem:[#allocation7 + $0x1e8] ss:$20 sps:$4 sm:$0xff]  }
 0x13b   :  { %v2305_v63 = vld [vmem:[#allocation7 + $0x214] ss:$20 sps:$4 sm:$0xff]  }
 0x13c   :  { %v417_v3 = vmul.f32 0.125, %v409_v1  ;;  %v415_v4 = vadd.f32 %v414_v2, %v413_v0  ;;  %v2300_v0 = vld [vmem:[#allocation7 + $0x208] ss:$20 sps:$4 sm:$0xff]   ;;  %v2303_v1 = vld [vmem:[#allocation7 + $0x210] ss:$20 sps:$4 sm:$0xff]  }
 0x13d   :  { %v2308_v2 = vld [vmem:[#allocation7 + $0x234] ss:$20 sps:$4 sm:$0xff]  }
 0x13e   :  { %v419_v5 = vpack.c.bf16 %v417_v3, %v417_v3  ;;  %v418_v6 = vmul.f32 0.125, %v415_v4  ;;  %v2311_v3 = vld [vmem:[#allocation7 + $0x23c] ss:$20 sps:$4 sm:$0xff]  }
 0x13f   :  { %v2306_v4 = vld [vmem:[#allocation7 + $0x230] ss:$20 sps:$4 sm:$0xff]  }
 0x140   :  { %v420_v7 = vpack.c.bf16 %v418_v6, %v418_v6  ;;  %v444_v8 = vunpack.c.l.b16 %v419_v5  ;;  %v2309_v5 = vld [vmem:[#allocation7 + $0x238] ss:$20 sps:$4 sm:$0xff]   ;;  %v2314_v6 = vld [vmem:[#allocation7 + $0x25c] ss:$20 sps:$4 sm:$0xff]  }
 0x142   :  { %v445_v9 = vunpack.c.l.b16 %v420_v7  ;;  %v2317_v7 = vld [vmem:[#allocation7 + $0x264] ss:$20 sps:$4 sm:$0xff]  }
 0x144   :  { %v447_v10 = vsel %vm446_vm1, %v445_v9, %v444_v8  ;;  %v2312_v8 = vld [vmem:[#allocation7 + $0x258] ss:$20 sps:$4 sm:$0xff]   ;;  %v2315_v9 = vld [vmem:[#allocation7 + $0x260] ss:$20 sps:$4 sm:$0xff]  }
 0x145   :  { %v448_v13 = vpack.c.b16 %v447_v10, %v447_v10  ;;  %v2320_v10 = vld [vmem:[#allocation7 + $0x284] ss:$20 sps:$4 sm:$0xff]  }
 0x147   :  { %643 = vmatmul.mubr.bf16.vlgmr.msra.gmra.mrb[0].mxu1 %v448_v13  ;;  %684 = vmatmul.mubr.bf16.vlgmr.msra.gmra.mrb[4].mxu0 %v448_v13 }
 0x148   :  { %1362 = vmatpush1.bf16.msra.mxu1 %v2222_v11  ;;  %1444 = vmatpush1.bf16.msra.mxu0 %v2225_v12  ;;  %v2323_v11 = vld [vmem:[#allocation7 + $0x28c] ss:$20 sps:$4 sm:$0xff]   ;;  %v422_v12 = vlaneseq }
 0x149   :  { %1363 = vmatprep.subr.bf16.mxu1 %v2230_v14  ;;  %1445 = vmatprep.subr.bf16.mxu0 %v2233_v15  ;;  %v2630_v15 = vld [vmem:[%s2704_s3 + $0x1] sm:$0xf] }
 0x14a   :  { %v2624_v13 = vshrl.u32 %v422_v12, 7  ;;  %v2380_v12 = vld [vmem:[#allocation7 + $0x414] ss:$20 sps:$4 sm:$0xff]  }
 0x14c   :  { %1364 = vmatpush1.bf16.msra.mxu1 %v2228_v16  ;;  %1446 = vmatpush1.bf16.msra.mxu0 %v2231_v17  ;;  %v424_v14 = vsub.s32 0, %v2624_v13  ;;  %v428_v16 = vsub.s32 1, %v2624_v13  ;;  %v436_v17 = vsub.s32 3, %v2624_v13 }
 0x14d   :  { %1365 = vmatprep.subr.bf16.mxu1 %v2236_v18  ;;  %1447 = vmatprep.subr.bf16.mxu0 %v2239_v19 }
 0x14e   :  { %v425_v18 = vrot.slane %v2630_v15, %v424_v14  ;;  %v429_v19 = vrot.slane %v2630_v15, %v428_v16 }
 0x150   :  { %1366 = vmatpush1.bf16.msra.mxu1 %v2234_v20  ;;  %1448 = vmatpush1.bf16.msra.mxu0 %v2237_v21  ;;  %v437_v20 = vrot.slane %v2630_v15, %v436_v17 }
 0x151   :  { %1367 = vmatprep.subr.bf16.mxu1 %v2242_v22  ;;  %1449 = vmatprep.subr.bf16.mxu0 %v2245_v23 }
 0x154   :  { %1368 = vmatpush1.bf16.msra.mxu1 %v2240_v24  ;;  %1450 = vmatpush1.bf16.msra.mxu0 %v2243_v25 }
 0x155   :  { %1369 = vmatprep.subr.bf16.mxu1 %v2248_v26  ;;  %1451 = vmatprep.subr.bf16.mxu0 %v2251_v27 }
 0x158   :  { %1370 = vmatpush1.bf16.msra.mxu1 %v2246_v28  ;;  %1452 = vmatpush1.bf16.msra.mxu0 %v2249_v29 }
 0x159   :  { %1371 = vmatprep.subr.bf16.mxu1 %v2254_v30  ;;  %1453 = vmatprep.subr.bf16.mxu0 %v2257_v31 }
 0x15c   :  { %1372 = vmatpush1.bf16.msra.mxu1 %v2252_v32  ;;  %1454 = vmatpush1.bf16.msra.mxu0 %v2255_v33 }
 0x15d   :  { %1373 = vmatprep.subr.bf16.mxu1 %v2260_v34  ;;  %1455 = vmatprep.subr.bf16.mxu0 %v2263_v35 }
 0x160   :  { %1374 = vmatpush1.bf16.msra.mxu1 %v2258_v36  ;;  %1456 = vmatpush1.bf16.msra.mxu0 %v2261_v37  ;;  %v2318_v36 = vld [vmem:[#allocation7 + $0x280] ss:$20 sps:$4 sm:$0xff]   ;;  %v2321_v37 = vld [vmem:[#allocation7 + $0x288] ss:$20 sps:$4 sm:$0xff]  }
 0x161   :  { %1375 = vmatprep.subr.bf16.mxu1 %v2266_v38  ;;  %1457 = vmatprep.subr.bf16.mxu0 %v2269_v39  ;;  %v2326_v39 = vld [vmem:[#allocation7 + $0x2ac] ss:$20 sps:$4 sm:$0xff]  }
 0x164   :  { %1376 = vmatpush1.bf16.msra.mxu1 %v2264_v40  ;;  %1458 = vmatpush1.bf16.msra.mxu0 %v2267_v41  ;;  %v2329_v40 = vld [vmem:[#allocation7 + $0x2b4] ss:$20 sps:$4 sm:$0xff]  }
 0x165   :  { %1377 = vmatprep.subr.bf16.mxu1 %v2272_v42  ;;  %1459 = vmatprep.subr.bf16.mxu0 %v2275_v43  ;;  %v2324_v42 = vld [vmem:[#allocation7 + $0x2a8] ss:$20 sps:$4 sm:$0xff]   ;;  %v2327_v43 = vld [vmem:[#allocation7 + $0x2b0] ss:$20 sps:$4 sm:$0xff]  }
 0x168   :  { %1378 = vmatpush1.bf16.msra.mxu1 %v2270_v44  ;;  %1460 = vmatpush1.bf16.msra.mxu0 %v2273_v45  ;;  %v2332_v44 = vld [vmem:[#allocation7 + $0x2d4] ss:$20 sps:$4 sm:$0xff]   ;;  %v2335_v45 = vld [vmem:[#allocation7 + $0x2dc] ss:$20 sps:$4 sm:$0xff]  }
 0x169   :  { %1379 = vmatprep.subr.bf16.mxu1 %v2278_v46  ;;  %1461 = vmatprep.subr.bf16.mxu0 %v2281_v47  ;;  %v2330_v46 = vld [vmem:[#allocation7 + $0x2d0] ss:$20 sps:$4 sm:$0xff]   ;;  %v2333_v47 = vld [vmem:[#allocation7 + $0x2d8] ss:$20 sps:$4 sm:$0xff]  }
 0x16c   :  { %1380 = vmatpush1.bf16.msra.mxu1 %v2276_v48  ;;  %1462 = vmatpush1.bf16.msra.mxu0 %v2279_v49  ;;  %v2338_v48 = vld [vmem:[#allocation7 + $0x2fc] ss:$20 sps:$4 sm:$0xff]   ;;  %v2341_v49 = vld [vmem:[#allocation7 + $0x304] ss:$20 sps:$4 sm:$0xff]  }
 0x16d   :  { %1381 = vmatprep.subr.bf16.mxu1 %v2284_v50  ;;  %1463 = vmatprep.subr.bf16.mxu0 %v2287_v51  ;;  %v2336_v50 = vld [vmem:[#allocation7 + $0x2f8] ss:$20 sps:$4 sm:$0xff]   ;;  %v2339_v51 = vld [vmem:[#allocation7 + $0x300] ss:$20 sps:$4 sm:$0xff]  }
 0x170   :  { %1382 = vmatpush1.bf16.msra.mxu1 %v2282_v52  ;;  %1464 = vmatpush1.bf16.msra.mxu0 %v2285_v53  ;;  %v2344_v52 = vld [vmem:[#allocation7 + $0x324] ss:$20 sps:$4 sm:$0xff]   ;;  %v2347_v53 = vld [vmem:[#allocation7 + $0x32c] ss:$20 sps:$4 sm:$0xff]  }
 0x171   :  { %1383 = vmatprep.subr.bf16.mxu1 %v2290_v54  ;;  %1465 = vmatprep.subr.bf16.mxu0 %v2293_v55  ;;  %v2342_v54 = vld [vmem:[#allocation7 + $0x320] ss:$20 sps:$4 sm:$0xff]   ;;  %v2345_v55 = vld [vmem:[#allocation7 + $0x328] ss:$20 sps:$4 sm:$0xff]  }
 0x174   :  { %1384 = vmatpush1.bf16.msra.mxu1 %v2288_v56  ;;  %1466 = vmatpush1.bf16.msra.mxu0 %v2291_v57  ;;  %v2350_v56 = vld [vmem:[#allocation7 + $0x34c] ss:$20 sps:$4 sm:$0xff]   ;;  %v2353_v57 = vld [vmem:[#allocation7 + $0x354] ss:$20 sps:$4 sm:$0xff]  }
 0x175   :  { %1385 = vmatprep.subr.bf16.mxu1 %v2296_v58  ;;  %1467 = vmatprep.subr.bf16.mxu0 %v2299_v59  ;;  %v2348_v58 = vld [vmem:[#allocation7 + $0x348] ss:$20 sps:$4 sm:$0xff]   ;;  %v2351_v59 = vld [vmem:[#allocation7 + $0x350] ss:$20 sps:$4 sm:$0xff]  }
 0x178   :  { %1386 = vmatpush1.bf16.msra.mxu1 %v2294_v60  ;;  %1468 = vmatpush1.bf16.msra.mxu0 %v2297_v61  ;;  %v2356_v60 = vld [vmem:[#allocation7 + $0x374] ss:$20 sps:$4 sm:$0xff]   ;;  %v2359_v61 = vld [vmem:[#allocation7 + $0x37c] ss:$20 sps:$4 sm:$0xff]  }
 0x179   :  { %1387 = vmatprep.subr.bf16.mxu1 %v2302_v62  ;;  %1469 = vmatprep.subr.bf16.mxu0 %v2305_v63  ;;  %v2354_v62 = vld [vmem:[#allocation7 + $0x370] ss:$20 sps:$4 sm:$0xff]   ;;  %v2357_v63 = vld [vmem:[#allocation7 + $0x378] ss:$20 sps:$4 sm:$0xff]  }
 0x17c   :  { %1388 = vmatpush1.bf16.msra.mxu1 %v2300_v0  ;;  %1470 = vmatpush1.bf16.msra.mxu0 %v2303_v1  ;;  %v2362_v0 = vld [vmem:[#allocation7 + $0x39c] ss:$20 sps:$4 sm:$0xff]   ;;  %v2365_v1 = vld [vmem:[#allocation7 + $0x3a4] ss:$20 sps:$4 sm:$0xff]  }
 0x17d   :  { %1389 = vmatprep.subr.bf16.mxu1 %v2308_v2  ;;  %1471 = vmatprep.subr.bf16.mxu0 %v2311_v3  ;;  %v2360_v2 = vld [vmem:[#allocation7 + $0x398] ss:$20 sps:$4 sm:$0xff]   ;;  %v2363_v3 = vld [vmem:[#allocation7 + $0x3a0] ss:$20 sps:$4 sm:$0xff]  }
 0x180   :  { %1390 = vmatpush1.bf16.msra.mxu1 %v2306_v4  ;;  %1472 = vmatpush1.bf16.msra.mxu0 %v2309_v5  ;;  %v2368_v4 = vld [vmem:[#allocation7 + $0x3c4] ss:$20 sps:$4 sm:$0xff]   ;;  %v2371_v5 = vld [vmem:[#allocation7 + $0x3cc] ss:$20 sps:$4 sm:$0xff]  }
 0x181   :  { %1391 = vmatprep.subr.bf16.mxu1 %v2314_v6  ;;  %1473 = vmatprep.subr.bf16.mxu0 %v2317_v7  ;;  %v2366_v6 = vld [vmem:[#allocation7 + $0x3c0] ss:$20 sps:$4 sm:$0xff]   ;;  %v2369_v7 = vld [vmem:[#allocation7 + $0x3c8] ss:$20 sps:$4 sm:$0xff]  }
 0x184   :  { %1392 = vmatpush1.bf16.msra.mxu1 %v2312_v8  ;;  %1474 = vmatpush1.bf16.msra.mxu0 %v2315_v9  ;;  %v2374_v8 = vld [vmem:[#allocation7 + $0x3ec] ss:$20 sps:$4 sm:$0xff]   ;;  %v2377_v9 = vld [vmem:[#allocation7 + $0x3f4] ss:$20 sps:$4 sm:$0xff]  }
 0x185   :  { %1402 = vmatprep.subr.bf16.mxu1 %v2320_v10  ;;  %1484 = vmatprep.subr.bf16.mxu0 %v2323_v11  ;;  %v2372_v10 = vld [vmem:[#allocation7 + $0x3e8] ss:$20 sps:$4 sm:$0xff]   ;;  %v2375_v11 = vld [vmem:[#allocation7 + $0x3f0] ss:$20 sps:$4 sm:$0xff]  }
 0x21a   :  { %v644_v21 = vpop.f32.mrb[0].mxu1  ;;  %v2643_v22 = vpop.f32.mrb[4].mxu0 }
 0x21b   :  { %v645_v23 = vadd.f32 %v644_v21, %v425_v18  ;;  %v646_v24 = vpop.f32.mrb[1].mxu1  ;;  %v687_v25 = vpop.f32.mrb[5].mxu0  ;;  %v2383_v18 = vld [vmem:[#allocation7 + $0x41c] ss:$20 sps:$4 sm:$0xff]  }
 0x21c   :  { %v647_v26 = vadd.f32 %v646_v24, %v429_v19  ;;  %v688_v27 = vadd.f32 %v687_v25, %v437_v20  ;;  %v648_v28 = vpop.f32.mrb[2].mxu1  ;;  %v689_v29 = vpop.f32.mrb[6].mxu0  ;;  %v2378_v19 = vld [vmem:[#allocation7 + $0x410] ss:$20 sps:$4 sm:$0xff]   ;;  %v2381_v20 = vld [vmem:[#allocation7 + $0x418] ss:$20 sps:$4 sm:$0xff]  }
 0x21d   :  { %v692_v30 = vmax.f32 %v645_v23, 0.0  ;;  %v649_v31 = vpop.f32.mrb[3].mxu1  ;;  %v690_v32 = vpop.f32.mrb[7].mxu0  ;;  %v2386_v21 = vld [vmem:[#allocation7 + $0x43c] ss:$20 sps:$4 sm:$0xff]  }
 0x21e   :  { %v693_v33 = vmax.f32 %v647_v26, 0.0  ;;  %v695_v34 = vmax.f32 %v688_v27, 0.0  ;;  %v2389_v23 = vld [vmem:[#allocation7 + $0x444] ss:$20 sps:$4 sm:$0xff]   ;;  %v2387_v25 = vld [vmem:[#allocation7 + $0x440] ss:$20 sps:$4 sm:$0xff]  }
 0x21f   :  { %v696_v38 = vpack.c.bf16 %v692_v30, %v692_v30  ;;  %v2384_v24 = vld [vmem:[#allocation7 + $0x438] ss:$20 sps:$4 sm:$0xff]   ;;  %v2390_v28 = vld [vmem:[#allocation7 + $0x460] ss:$20 sps:$4 sm:$0xff]   ;;  %v2393_v29 = vld [vmem:[#allocation7 + $0x468] ss:$20 sps:$4 sm:$0xff]  }
 0x220   :  { %v697_v35 = vpack.c.bf16 %v693_v33, %v693_v33  ;;  %v699_v41 = vpack.c.bf16 %v695_v34, %v695_v34  ;;  %v2392_v26 = vld [vmem:[#allocation7 + $0x464] ss:$20 sps:$4 sm:$0xff]   ;;  %v2395_v27 = vld [vmem:[#allocation7 + $0x46c] ss:$20 sps:$4 sm:$0xff]   ;;  %v432_v30 = vsub.s32 2, %v2624_v13 }
 0x221   :  { %v2398_v31 = vld [vmem:[#allocation7 + $0x48c] ss:$20 sps:$4 sm:$0xff]   ;;  %v2401_v32 = vld [vmem:[#allocation7 + $0x494] ss:$20 sps:$4 sm:$0xff]   ;;  %v2399_v34 = vld [vmem:[#allocation7 + $0x490] ss:$20 sps:$4 sm:$0xff]  }
 0x222   :  { %1393 = vmatprep.mubr.bf16.mxu1 %v697_v35  ;;  %1475 = vmatprep.mubr.bf16.mxu0 %v697_v35  ;;  %v2396_v33 = vld [vmem:[#allocation7 + $0x488] ss:$20 sps:$4 sm:$0xff]   ;;  %v433_v35 = vrot.slane %v2630_v15, %v432_v30 }
 0x223   :  { %1394 = vmatmul.mubr.bf16.vlgmr.msra.gmra.mrb[4].mxu1 %v696_v38  ;;  %1476 = vmatmul.mubr.bf16.vlgmr.msra.gmra.mrb[8].mxu0 %v696_v38  ;;  %v2402_v38 = vld [vmem:[#allocation7 + $0x4b0] ss:$20 sps:$4 sm:$0xff]  }
 0x224   :  { %1403 = vmatpush1.bf16.msra.mxu1 %v2318_v36  ;;  %1485 = vmatpush1.bf16.msra.mxu0 %v2321_v37  ;;  %v2404_v36 = vld [vmem:[#allocation7 + $0x4b4] ss:$20 sps:$4 sm:$0xff]   ;;  %v2407_v37 = vld [vmem:[#allocation7 + $0x4bc] ss:$20 sps:$4 sm:$0xff]  }
 0x225   :  { %1434 = vmatprep.mubr.bf16.mxu1 %v699_v41  ;;  %1516 = vmatprep.mubr.bf16.mxu0 %v699_v41  ;;  %v2410_v41 = vld [vmem:[#allocation7 + $0x4dc] ss:$20 sps:$4 sm:$0xff]  }
 0x226   :  { %1404 = vmatprep.subr.bf16.mxu1 %v2326_v39  ;;  %1486 = vmatprep.subr.bf16.mxu0 %v2329_v40  ;;  %v2405_v39 = vld [vmem:[#allocation7 + $0x4b8] ss:$20 sps:$4 sm:$0xff]   ;;  %v686_v40 = vadd.f32 %v2643_v22, %v433_v35  ;;  %v2417_v22 = vld [vmem:[#allocation7 + $0x290] ss:$20 sps:$4 sm:$0xff]  }
 0x227   :  { %v2437_v35 = vld [vmem:[#allocation7 + $0x358] ss:$20 sps:$4 sm:$0xff]  }
 0x228   :  { %1405 = vmatpush1.bf16.msra.mxu1 %v2324_v42  ;;  %1487 = vmatpush1.bf16.msra.mxu0 %v2327_v43  ;;  %v2413_v42 = vld [vmem:[#allocation7 + $0x4e4] ss:$20 sps:$4 sm:$0xff]  }
 0x229   :  { %1406 = vmatprep.subr.bf16.mxu1 %v2332_v44  ;;  %1488 = vmatprep.subr.bf16.mxu0 %v2335_v45  ;;  %v2408_v43 = vld [vmem:[#allocation7 + $0x4d8] ss:$20 sps:$4 sm:$0xff]   ;;  %v2411_v44 = vld [vmem:[#allocation7 + $0x4e0] ss:$20 sps:$4 sm:$0xff]   ;;  %v694_v45 = vmax.f32 %v686_v40, 0.0 }
 0x22a   :  { %v2442_v40 = vld [vmem:[#allocation7 + $0x268] ss:$20 sps:$4 sm:$0xff]  }
 0x22b   :  { %v698_v15 = vpack.c.bf16 %v694_v45, %v694_v45 }
 0x22c   :  { %1407 = vmatpush1.bf16.msra.mxu1 %v2330_v46  ;;  %1489 = vmatpush1.bf16.msra.mxu0 %v2333_v47  ;;  %v2414_v46 = vld [vmem:[#allocation7 + $0x150] ss:$20 sps:$4 sm:$0xff]  }
 0x22d   :  { %1408 = vmatprep.subr.bf16.mxu1 %v2338_v48  ;;  %1490 = vmatprep.subr.bf16.mxu0 %v2341_v49  ;;  %v2415_v47 = vld [vmem:[#allocation7 + $0x3d0] ss:$20 sps:$4 sm:$0xff]   ;;  %v2418_v49 = vld [vmem:[#allocation7 + $0x178] ss:$20 sps:$4 sm:$0xff]  }
 0x22e   :  { %v2416_v48 = vld [vmem:[#allocation7 + $0x10] ss:$20 sps:$4 sm:$0xff]  }
 0x230   :  { %1409 = vmatpush1.bf16.msra.mxu1 %v2336_v50  ;;  %1491 = vmatpush1.bf16.msra.mxu0 %v2339_v51  ;;  %v2419_v50 = vld [vmem:[#allocation7 + $0x3f8] ss:$20 sps:$4 sm:$0xff]  }
 0x231   :  { %1410 = vmatprep.subr.bf16.mxu1 %v2344_v52  ;;  %1492 = vmatprep.subr.bf16.mxu0 %v2347_v53  ;;  %v2420_v51 = vld [vmem:[#allocation7 + $0x38] ss:$20 sps:$4 sm:$0xff]   ;;  %v2422_v53 = vld [vmem:[#allocation7 + $0x1a0] ss:$20 sps:$4 sm:$0xff]  }
 0x232   :  { %v2421_v52 = vld [vmem:[#allocation7 + $0x2b8] ss:$20 sps:$4 sm:$0xff]  }
 0x234   :  { %1411 = vmatpush1.bf16.msra.mxu1 %v2342_v54  ;;  %1493 = vmatpush1.bf16.msra.mxu0 %v2345_v55  ;;  %v2423_v54 = vld [vmem:[#allocation7 + $0x420] ss:$20 sps:$4 sm:$0xff]  }
 0x235   :  { %1412 = vmatprep.subr.bf16.mxu1 %v2350_v56  ;;  %1494 = vmatprep.subr.bf16.mxu0 %v2353_v57  ;;  %v2424_v55 = vld [vmem:[#allocation7 + $0x60] ss:$20 sps:$4 sm:$0xff]   ;;  %v2426_v57 = vld [vmem:[#allocation7 + $0x1c8] ss:$20 sps:$4 sm:$0xff]  }
 0x236   :  { %v2425_v56 = vld [vmem:[#allocation7 + $0x2e0] ss:$20 sps:$4 sm:$0xff]  }
 0x238   :  { %1413 = vmatpush1.bf16.msra.mxu1 %v2348_v58  ;;  %1495 = vmatpush1.bf16.msra.mxu0 %v2351_v59  ;;  %v2427_v58 = vld [vmem:[#allocation7 + $0x448] ss:$20 sps:$4 sm:$0xff]   ;;  %v302_v59 = vld [vmem:[%s2704_s3 + $0x5] sm:$0xf] }
 0x239   :  { %1414 = vmatprep.subr.bf16.mxu1 %v2356_v60  ;;  %1496 = vmatprep.subr.bf16.mxu0 %v2359_v61  ;;  %v704_v60 = vrot.slane %v302_v59, %v424_v14  ;;  %v712_v61 = vrot.slane %v302_v59, %v432_v30  ;;  %v2432_v30 = vld [vmem:[#allocation7 + $0xb0] ss:$20 sps:$4 sm:$0xff]  }
 0x23c   :  { %1415 = vmatpush1.bf16.msra.mxu1 %v2354_v62  ;;  %1497 = vmatpush1.bf16.msra.mxu0 %v2357_v63  ;;  %v708_v62 = vrot.slane %v302_v59, %v428_v16  ;;  %v716_v63 = vrot.slane %v302_v59, %v436_v17 }
 0x23d   :  { %1416 = vmatprep.subr.bf16.mxu1 %v2362_v0  ;;  %1498 = vmatprep.subr.bf16.mxu0 %v2365_v1 }
 0x240   :  { %1417 = vmatpush1.bf16.msra.mxu1 %v2360_v2  ;;  %1499 = vmatpush1.bf16.msra.mxu0 %v2363_v3 }
 0x241   :  { %1418 = vmatprep.subr.bf16.mxu1 %v2368_v4  ;;  %1500 = vmatprep.subr.bf16.mxu0 %v2371_v5 }
 0x244   :  { %1419 = vmatpush1.bf16.msra.mxu1 %v2366_v6  ;;  %1501 = vmatpush1.bf16.msra.mxu0 %v2369_v7 }
 0x245   :  { %1420 = vmatprep.subr.bf16.mxu1 %v2374_v8  ;;  %1502 = vmatprep.subr.bf16.mxu0 %v2377_v9 }
 0x248   :  { %1421 = vmatpush1.bf16.msra.mxu1 %v2372_v10  ;;  %1503 = vmatpush1.bf16.msra.mxu0 %v2375_v11 }
 0x249   :  { %1422 = vmatprep.subr.bf16.mxu1 %v2380_v12  ;;  %1504 = vmatprep.subr.bf16.mxu0 %v2383_v18 }
 0x24c   :  { %1423 = vmatpush1.bf16.msra.mxu1 %v2378_v19  ;;  %1505 = vmatpush1.bf16.msra.mxu0 %v2381_v20 }
 0x24d   :  { %1424 = vmatprep.subr.bf16.mxu1 %v2386_v21  ;;  %1506 = vmatprep.subr.bf16.mxu0 %v2389_v23 }
 0x250   :  { %1425 = vmatpush1.bf16.msra.mxu1 %v2384_v24  ;;  %1507 = vmatpush1.bf16.msra.mxu0 %v2387_v25 }
 0x251   :  { %1426 = vmatprep.subr.bf16.mxu1 %v2392_v26  ;;  %1508 = vmatprep.subr.bf16.mxu0 %v2395_v27  ;;  %v2428_v26 = vld [vmem:[#allocation7 + $0x88] ss:$20 sps:$4 sm:$0xff]  }
 0x252   :  { %v2429_v27 = vld [vmem:[#allocation7 + $0x308] ss:$20 sps:$4 sm:$0xff]  }
 0x254   :  { %1427 = vmatpush1.bf16.msra.mxu1 %v2390_v28  ;;  %1509 = vmatpush1.bf16.msra.mxu0 %v2393_v29  ;;  %v2430_v28 = vld [vmem:[#allocation7 + $0x1f0] ss:$20 sps:$4 sm:$0xff]  }
 0x255   :  { %1428 = vmatprep.subr.bf16.mxu1 %v2398_v31  ;;  %1510 = vmatprep.subr.bf16.mxu0 %v2401_v32  ;;  %v2431_v29 = vld [vmem:[#allocation7 + $0x470] ss:$20 sps:$4 sm:$0xff]   ;;  %v2434_v32 = vld [vmem:[#allocation7 + $0x218] ss:$20 sps:$4 sm:$0xff]  }
 0x256   :  { %v2433_v31 = vld [vmem:[#allocation7 + $0x330] ss:$20 sps:$4 sm:$0xff]  }
 0x258   :  { %1429 = vmatpush1.bf16.msra.mxu1 %v2396_v33  ;;  %1511 = vmatpush1.bf16.msra.mxu0 %v2399_v34  ;;  %v2435_v33 = vld [vmem:[#allocation7 + $0x498] ss:$20 sps:$4 sm:$0xff]  }
 0x259   :  { %1430 = vmatprep.subr.bf16.mxu1 %v2404_v36  ;;  %1512 = vmatprep.subr.bf16.mxu0 %v2407_v37  ;;  %v2436_v34 = vld [vmem:[#allocation7 + $0xd8] ss:$20 sps:$4 sm:$0xff]   ;;  %v2438_v36 = vld [vmem:[#allocation7 + $0x240] ss:$20 sps:$4 sm:$0xff]  }
 0x25a   :  { %v2439_v37 = vld [vmem:[#allocation7 + $0x4c0] ss:$20 sps:$4 sm:$0xff]  }
 0x25c   :  { %1431 = vmatpush1.bf16.msra.mxu1 %v2402_v38  ;;  %1513 = vmatpush1.bf16.msra.mxu0 %v2405_v39  ;;  %v2440_v38 = vld [vmem:[#allocation7 + $0x100] ss:$20 sps:$4 sm:$0xff]  }
 0x25d   :  { %1432 = vmatprep.subr.bf16.mxu1 %v2410_v41  ;;  %1514 = vmatprep.subr.bf16.mxu0 %v2413_v42  ;;  %v2441_v39 = vld [vmem:[#allocation7 + $0x380] ss:$20 sps:$4 sm:$0xff]   ;;  %v2443_v41 = vld [vmem:[#allocation7 + $0x4e8] ss:$20 sps:$4 sm:$0xff]  }
 0x25e   :  { %v2444_v42 = vld [vmem:[#allocation7 + $0x128] ss:$20 sps:$4 sm:$0xff]  }
 0x260   :  { %1433 = vmatpush1.bf16.msra.mxu1 %v2408_v43  ;;  %1515 = vmatpush1.bf16.msra.mxu0 %v2411_v44  ;;  %v2445_v43 = vld [vmem:[#allocation7 + $0x3a8] ss:$20 sps:$4 sm:$0xff]  }
 0x261   :  { %2078 = vmatprep.subr.bf16.mxu1 %v2414_v46  ;;  %2100 = vmatprep.subr.bf16.mxu0 %v2415_v47 }
 0x263   :  { %1435 = vmatmul.mubr.bf16.vlgmr.msra.gmra.mrb[4].mxu1 %v698_v15  ;;  %1517 = vmatmul.mubr.bf16.vlgmr.msra.gmra.mrb[8].mxu0 %v698_v15  ;;  %v2552_v15 = vmov 1983009808  }
 0x264   :  { %2079 = vmatpush3.bf16.msra.mxu1 %v2416_v48  ;;  %2101 = vmatpush3.bf16.msra.mxu0 %v2417_v22  ;;  %v1834_v46 = vunpack.c.l.s4 %v2552_v15 }
 0x265   :  { %2080 = vmatprep.subr.bf16.mxu1 %v2418_v49  ;;  %2102 = vmatprep.subr.bf16.mxu0 %v2419_v50 }
 0x266   :  { %v1835_v47 = vunpack.c.0.s8 %v1834_v46 }
 0x268   :  { %2081 = vmatpush3.bf16.msra.mxu1 %v2420_v51  ;;  %2103 = vmatpush3.bf16.msra.mxu0 %v2421_v52  ;;  %v1838_v22 = vsub.s32 %v1835_v47, %v2624_v13 }
 0x269   :  { %2082 = vmatprep.subr.bf16.mxu1 %v2422_v53  ;;  %2104 = vmatprep.subr.bf16.mxu0 %v2423_v54 }
 0x26c   :  { %2083 = vmatpush3.bf16.msra.mxu1 %v2424_v55  ;;  %2105 = vmatpush3.bf16.msra.mxu0 %v2425_v56 }
 0x26d   :  { %2084 = vmatprep.subr.bf16.mxu1 %v2426_v57  ;;  %2106 = vmatprep.subr.bf16.mxu0 %v2427_v58 }
 0x270   :  { %2085 = vmatpush3.bf16.msra.mxu1 %v2428_v26  ;;  %2107 = vmatpush3.bf16.msra.mxu0 %v2429_v27 }
 0x271   :  { %2086 = vmatprep.subr.bf16.mxu1 %v2430_v28  ;;  %2108 = vmatprep.subr.bf16.mxu0 %v2431_v29 }
 0x274   :  { %2087 = vmatpush3.bf16.msra.mxu1 %v2432_v30  ;;  %2109 = vmatpush3.bf16.msra.mxu0 %v2433_v31 }
 0x275   :  { %2088 = vmatprep.subr.bf16.mxu1 %v2434_v32  ;;  %2110 = vmatprep.subr.bf16.mxu0 %v2435_v33 }
 0x278   :  { %2089 = vmatpush3.bf16.msra.mxu1 %v2436_v34  ;;  %2111 = vmatpush3.bf16.msra.mxu0 %v2437_v35 }
 0x279   :  { %2090 = vmatprep.subr.bf16.mxu1 %v2438_v36  ;;  %2112 = vmatprep.subr.bf16.mxu0 %v2439_v37 }
 0x27c   :  { %2091 = vmatpush3.bf16.msra.mxu1 %v2440_v38  ;;  %2113 = vmatpush3.bf16.msra.mxu0 %v2441_v39 }
 0x27d   :  { %2092 = vmatprep.subr.bf16.mxu1 %v2442_v40  ;;  %2114 = vmatprep.subr.bf16.mxu0 %v2443_v41 }
 0x280   :  { %2093 = vmatpush3.bf16.msra.mxu1 %v2444_v42  ;;  %2115 = vmatpush3.bf16.msra.mxu0 %v2445_v43 }
 0x336   :  { %v1436_v0 = vpop.f32.mrb[4].mxu1  ;;  %v1518_v1 = vpop.f32.mrb[8].mxu0 }
 0x337   :  { %v2661_v2 = vadd.f32 %v1436_v0, %v704_v60  ;;  %v2663_v3 = vadd.f32 %v1518_v1, %v712_v61  ;;  %v1438_v4 = vpop.f32.mrb[5].mxu1  ;;  %v1520_v5 = vpop.f32.mrb[9].mxu0 }
 0x338   :  { %v2665_v6 = vadd.f32 %v1438_v4, %v708_v62  ;;  %v2667_v14 = vadd.f32 %v1520_v5, %v716_v63  ;;  %v1440_v7 = vpop.f32.mrb[6].mxu1  ;;  %v1522_v8 = vpop.f32.mrb[10].mxu0  ;;  %v2036_v63 = vld [vmem:[%s2704_s3 + $0x9] ss:$0 sm:$0xff] }
 0x339   :  { %v1525_v16 = vmul.f32 %v2661_v2, %v2661_v2  ;;  %v1441_v9 = vpop.f32.mrb[7].mxu1  ;;  %v1523_v17 = vpop.f32.mrb[11].mxu0  ;;  %v1527_v10 = vmul.f32 %v2663_v3, %v2663_v3 }
 0x33a   :  { %v1526_v11 = vmul.f32 %v2665_v6, %v2665_v6  ;;  %v1528_v19 = vmul.f32 %v2667_v14, %v2667_v14 }
 0x33b   :  { %v1530_v12 = vsel %vm1529_vm2, %v1525_v16, 0.0  ;;  %v1533_v21 = vsel %vm1529_vm2, %v1527_v10, 0.0 }
 0x33c   :  { %v1531_v18 = vsel %vm1529_vm2, %v1526_v11, 0.0  ;;  %v1535_v24 = vsel %vm1529_vm2, %v1528_v19, 0.0 }
 0x33d   :  { %v1532_v20 = vadd.f32 %v1531_v18, %v1530_v12 }
 0x33f   :  { %v1534_v23 = vadd.f32 %v1533_v21, %v1532_v20 }
 0x341   :  { %v1536_v25 = vadd.f32 %v1535_v24, %v1534_v23 }
 0x343   :  { %1537 = vadd.xlane.f32.xlu0 %v1536_v25 }
 0x3d0   :  { %v1538_v44 = vpop.xlane.xlu0 %1537 }
 0x3d1   :  { %v1539_v45 = vmax.f32 %v1538_v44, 1e-24 }
 0x3d3   :  { %2446 = vrsqrt.f32 %v1539_v45 }
 0x3dd   :  { %v2447_v48 = vpop.eup %2446 }
 0x3de   :  { %v1541_v49 = vmul.f32 %v2447_v48, %v2661_v2  ;;  %v1542_v50 = vmul.f32 %v2447_v48, %v2665_v6  ;;  %v1543_v51 = vmul.f32 %v2447_v48, %v2663_v3  ;;  %v1544_v52 = vmul.f32 %v2447_v48, %v2667_v14 }
 0x3e0   :  { %v1546_v53 = vpack.c.bf16 %v1542_v50, %v1542_v50  ;;  %v1831_v54 = vcombine.low %v1541_v49, %v1542_v50  ;;  %v1548_v55 = vpack.c.bf16 %v1544_v52, %v1544_v52  ;;  %v1832_v56 = vcombine.low %v1543_v51, %v1544_v52 }
 0x3e1   :  { %v1545_v57 = vpack.c.bf16 %v1541_v49, %v1541_v49  ;;  %v1547_v58 = vpack.c.bf16 %v1543_v51, %v1543_v51 }
 0x3e2   :  { %1779 = vmatprep.mubr.bf16.mxu1 %v1546_v53  ;;  %1819 = vmatprep.mubr.bf16.mxu0 %v1548_v55  ;;  %v1839_v59 = vrot.slane %v1831_v54, %v1838_v22  ;;  %v1846_v60 = vrot.slane %v1832_v56, %v1838_v22 }
 0x3e3   :  { %1780 = vmatmul.mubr.bf16.vlgmr.msra.gmra.mrb[8].mxu1 %v1545_v57  ;;  %1820 = vmatmul.mubr.bf16.vlgmr.msra.gmra.mrb[12].mxu0 %v1547_v58 }
 0x3e4   :  { %v1847_v13 = vcombine.low %v1839_v59, %v1846_v60 }
 0x3e6   :  { %1849 = vst [vmem:[#allocation8] sm:$0xff] %v1847_v13 }
 0x4b6   :  { %v2094_v61 = vpop.f32.mrb[8].mxu1  ;;  %v2116_v62 = vpop.f32.mrb[12].mxu0 }
 0x4b7   :  { %v2095_v0 = vpop.f32.mrb[9].mxu1  ;;  %v2117_v1 = vpop.f32.mrb[13].mxu0 }
 0x4b8   :  { %v2096_v2 = vadd.f32 %v2095_v0, %v2094_v61  ;;  %v2118_v3 = vadd.f32 %v2117_v1, %v2116_v62  ;;  %v2097_v4 = vpop.f32.mrb[10].mxu1  ;;  %v2119_v5 = vpop.f32.mrb[14].mxu0 }
 0x4b9   :  { %v2098_v6 = vpop.f32.mrb[11].mxu1  ;;  %v2120_v14 = vpop.f32.mrb[15].mxu0 }
 0x4ba   :  { %v1782_v7 = vadd.f32 %v2096_v2, %v2036_v63 }
 0x4bc   :  { %v1822_v8 = vadd.f32 %v2118_v3, %v1782_v7 }
 0x4be   :  { %1850 = vst [vmem:[#allocation8 + $0x8] sm:$0x3] %v1822_v8 }
 0x4bf   :  { %2525 = shalt.err (!%p2522_p0)
}
 0x4c0   :  { %s2526_s12 = scalar_lea.hbm %s2705_s4, 160 }
 0x4c1   :  { %p2527_p1 = scmp.ne.s32.totalorder %s2705_s4, %s2526_s12  ;;  %p2530_p2 = scmp.lt.u32.totalorder %s2526_s12, %s2705_s4 }
 0x4c3   :  { %p2532_p3 = pnand %p2530_p2, %p2527_p1 }
 0x4c5   :  { %2535 = shalt.err (!%p2532_p3)
}
 0x4c6   :  { %1860 = dma.vmem_to_hbm [thread:$0]  %s1858_s9, 160, %s2705_s4, [#allocation4]  }
 0x4c7   :  { %2540 = dma.done.wait [#allocation4], 160  }
 0x4c8   :  { %2541 = vsyncadd [#allocation4], 4294967136 }
 0x4c9   :  { %1864 = vsyncpa [#allocation3], 1 }
 0x4ca   :  { %1865 = vsyncpa [#allocation6], 1 }
 0x4cb   :  { %1866 = vsyncpa [#allocation4], 1 }

</bundles_post_ra>
